<compile_context>
chip_gen: v7x
topology: tpu7x:2x2x1
jax: 0.10.0
libtpu: 0.0.40
codegen_flags: <defaults>
</compile_context>

<pallas_src>
import numpy as np
import jax
import jax.numpy as jnp
from jax.experimental import pallas as pl
from jax.experimental.pallas import tpu as pltpu


def _round_up(x, m):
    return ((x + m - 1) // m) * m


TILE_N = 256  # node-tile rows when the graph is large (multiple of 128, MXU-friendly)


# ----------------------------------------------------------------------------- #
# Pallas kernel
# ----------------------------------------------------------------------------- #
def _hconv_kernel(x_ref, h_ref, theta_ref, dinv_ref, binv_ref, bias_ref,
                  o_ref, edge_ref):
    g = pl.program_id(0)   # phase: 0 = accumulate edge features, 1 = emit node tiles
    i = pl.program_id(1)   # node-tile index

    @pl.when(jnp.logical_and(g == 0, i == 0))
    def _():
        edge_ref[...] = jnp.zeros_like(edge_ref)

    @pl.when(g == 0)
    def _():
        # X_tile @ Theta  (bf16 operands, f32 accumulation on the MXU)
        xw = jnp.dot(x_ref[...], theta_ref[...],
                     preferred_element_type=jnp.float32)              # [tN, Coutp]
        # H_tile^T @ xw via transposed contraction — no second copy of H needed.
        edge_ref[...] += jax.lax.dot_general(
            h_ref[...], xw.astype(jnp.bfloat16),
            dimension_numbers=(((0,), (0,)), ((), ())),
            preferred_element_type=jnp.float32)                       # [Epad, Coutp]

    @pl.when(g == 1)
    def _():
        @pl.when(i == 0)
        def _():
            edge_ref[...] *= binv_ref[...]                            # B^-1, once
        node = jnp.dot(h_ref[...], edge_ref[...].astype(jnp.bfloat16),
                       preferred_element_type=jnp.float32)            # [tN, Coutp]
        o_ref[...] = node * dinv_ref[...] + bias_ref[...]


@jax.jit
def _hconv_call(x_p, h_p, th_p, dinv_p, binv_p, b_p):
    Npad, Cinp = x_p.shape
    Epad = h_p.shape[1]
    Coutp = th_p.shape[1]
    tile_n = TILE_N if Npad >= TILE_N else Npad
    num_tiles = Npad // tile_n

    flops = 2 * Npad * Cinp * Coutp + 4 * Npad * Epad * Coutp
    bytes_accessed = (x_p.size * 2 + 2 * h_p.size * 2 + th_p.size * 2
                      + Npad * Coutp * 4 + (Npad + Epad + Coutp) * 4)

    return pl.pallas_call(
        _hconv_kernel,
        out_shape=jax.ShapeDtypeStruct((Npad, Coutp), jnp.float32),
        grid=(2, num_tiles),
        in_specs=[
            # X tile: only needed in phase 0 (held at block 0 during phase 1)
            pl.BlockSpec((tile_n, Cinp), lambda g, i: ((1 - g) * i, 0)),
            # H tile: streamed in both phases (single copy, no H^T input)
            pl.BlockSpec((tile_n, Epad), lambda g, i: (i, 0)),
            # Theta: resident
            pl.BlockSpec((Cinp, Coutp), lambda g, i: (0, 0)),
            # D^-1 tile: only needed in phase 1
            pl.BlockSpec((tile_n, 1), lambda g, i: (g * i, 0)),
            # B^-1: resident
            pl.BlockSpec((Epad, 1), lambda g, i: (0, 0)),
            # bias: resident
            pl.BlockSpec((1, Coutp), lambda g, i: (0, 0)),
        ],
        out_specs=pl.BlockSpec((tile_n, Coutp), lambda g, i: (g * i, 0)),
        scratch_shapes=[pltpu.VMEM((Epad, Coutp), jnp.float32)],
        compiler_params=pltpu.CompilerParams(
            dimension_semantics=("arbitrary", "arbitrary"),
            vmem_limit_bytes=64 * 1024 * 1024),
        cost_estimate=pl.CostEstimate(flops=flops, transcendentals=0,
                                      bytes_accessed=bytes_accessed),
    )(x_p, h_p, th_p, dinv_p, binv_p, b_p)


# ----------------------------------------------------------------------------- #
# Host wrapper
# ----------------------------------------------------------------------------- #
def hypergraph_conv(node, hyperedge_index, theta, bias):
    """PyG HypergraphConv(use_attention=False) forward, fused in one Pallas kernel."""
    node = jnp.asarray(node, jnp.float32)
    N, Cin = node.shape
    Cout = theta.shape[1]
    he = np.asarray(hyperedge_index)
    E = int(he[1].max()) + 1

    # Dense incidence with multiplicities (matches scatter_add over duplicate pairs).
    # TODO(synk): for large sparse graphs, keep hyperedge_index in SMEM via
    # PrefetchScalarGridSpec and gather node rows per edge tile instead of densifying.
    H = np.zeros((N, E), np.float32)
    np.add.at(H, (he[0], he[1]), 1.0)

    # Host-side degree inverses (1/0 -> 0, matching PyG's inf masking).
    deg = H.sum(axis=1)
    bsz = H.sum(axis=0)
    d_inv = np.where(deg > 0, 1.0 / deg, 0.0).astype(np.float32)
    b_inv = np.where(bsz > 0, 1.0 / bsz, 0.0).astype(np.float32)

    # Pad to TPU-friendly sizes (zero padding is exact: zero rows/cols have zero
    # degree -> zero inverse -> zero contribution; result is sliced back).
    Npad = _round_up(max(N, 8), 8)
    if Npad > TILE_N:
        Npad = _round_up(Npad, TILE_N)
    Epad = _round_up(max(E, 128), 128)
    Cinp = _round_up(Cin, 128)
    Coutp = _round_up(Cout, 128)

    x_p = jnp.zeros((Npad, Cinp), jnp.float32).at[:N, :Cin].set(node)
    x_p = x_p.astype(jnp.bfloat16)

    h_np = np.zeros((Npad, Epad), np.float32)
    h_np[:N, :E] = H
    h_p = jnp.asarray(h_np, jnp.bfloat16)          # integer counts: exact in bf16

    th_np = np.zeros((Cinp, Coutp), np.float32)
    th_np[:Cin, :Cout] = np.asarray(theta, np.float32)
    th_p = jnp.asarray(th_np, jnp.bfloat16)

    dinv_np = np.zeros((Npad, 1), np.float32)
    dinv_np[:N, 0] = d_inv
    binv_np = np.zeros((Epad, 1), np.float32)
    binv_np[:E, 0] = b_inv
    b_np = np.zeros((1, Coutp), np.float32)
    b_np[0, :Cout] = np.asarray(bias, np.float32)

    out = _hconv_call(x_p, h_p, th_p,
                      jnp.asarray(dinv_np), jnp.asarray(binv_np), jnp.asarray(b_np))
    return out[:N, :Cout]


def weighted_average(tensors, weights):
    # Plain jnp: trivially memory-bound elementwise op, XLA fuses it; a dedicated
    # pallas_call here would pay launch overhead + lane-sparse (<128) masked stores.
    out = jnp.asarray(tensors[0], jnp.float32) * float(weights[0])
    for t, w in zip(tensors[1:], weights[1:]):
        out = out + jnp.asarray(t, jnp.float32) * float(w)
    return out


# ----------------------------------------------------------------------------- #
# The Hypergraph module (JAX/Pallas version)
# ----------------------------------------------------------------------------- #
class HypergraphPallas:
    def __init__(self, in_channels, out_channels, key):
        k1, k2, k3 = jax.random.split(key, 3)
        # HypergraphConv weight (lin, no bias in lin) + conv bias
        self.theta = jax.random.normal(k1, (in_channels, out_channels), jnp.float32) \
            * (1.0 / np.sqrt(in_channels))
        self.conv_bias = jnp.zeros((out_channels,), jnp.float32)
        # W1 / W2 / dropout are only used in hyper_calculation, which forward()
        # never calls; initialized for parameter parity.
        self.W1_w = jax.random.normal(k2, (in_channels, 64), jnp.float32) / np.sqrt(in_channels)
        self.W1_b = jnp.zeros((64,), jnp.float32)
        self.W2_w = jax.random.normal(k3, (64, out_channels), jnp.float32) / 8.0
        self.W2_b = jnp.zeros((out_channels,), jnp.float32)
        # TODO(synk): hyper_calculation uses dglsp sparse ops and is never invoked
        # by forward(); it is not ported.

    # --- HypergraphConv ------------------------------------------------------ #
    def conv_hyper(self, x, hyperedge_index):
        return hypergraph_conv(x, hyperedge_index, self.theta, self.conv_bias)

    # --- PAfusion (host-side index glue, Pallas conv) ------------------------ #
    def PAfusion(self, product, av, hyper):
        Na, Np = av.shape[0], product.shape[0]
        product_tensor = np.stack([np.arange(Na, Na + Np), np.arange(Np)])
        final_tensor = np.concatenate([np.asarray(hyper), product_tensor], axis=1)
        node = jnp.concatenate([av, product], axis=0)
        return self.conv_hyper(node, final_tensor)

    # --- CPAfusion (host-side index glue, Pallas conv) ----------------------- #
    def CPAfusion(self, product, av, category, hyper_CPA, hyper_PA):
        hyper_CPA = np.asarray(hyper_CPA)
        hyper_PA = np.asarray(hyper_PA)
        Np, Nc = product.shape[0], category.shape[0]
        category_tensor = np.stack([np.arange(Np, Np + Nc), np.arange(Nc)])

        p_av_dictionary = {k: [] for k in range(int(hyper_PA[1].max()) + 1)}
        for i in range(hyper_PA.shape[1]):
            p_av_dictionary[int(hyper_PA[1, i])].append(int(hyper_PA[0, i]))

        tensor1, tensor2 = [], []
        for i in range(hyper_CPA.shape[1]):
            tensor1.extend(p_av_dictionary[int(hyper_CPA[0, i])])
            for _ in range(len(p_av_dictionary[int(hyper_CPA[0, i])])):
                tensor2.append(int(hyper_CPA[1, i]))
        tensor1_n = [x + (Np + Nc) for x in tensor1]
        av_tensor = np.stack([np.asarray(tensor1_n), np.asarray(tensor2)])

        final_tensor = np.concatenate(
            [hyper_CPA, category_tensor, av_tensor], axis=1).astype(np.int64)
        node = jnp.concatenate([product, category, av], axis=0)
        return self.conv_hyper(node, final_tensor)

    # --- forward -------------------------------------------------------------- #
    def forward(self, info, hyperedges, hyperedge_type):
        Np = info['product'].shape[0]
        Nc = info['category'].shape[0]
        Na = info['av'].shape[0]

        if hyperedge_type == 'user':
            also_view_out = self.conv_hyper(info['product'], hyperedges['also_view'])
            also_buy_out = self.conv_hyper(info['product'], hyperedges['also_buy'])
            out_p = weighted_average([also_view_out, also_buy_out], [0.5, 0.5])
            x_dict = {'product': out_p, 'category': info['category'], 'av': info['av']}

        elif hyperedge_type == 'inventory':
            hyper_PA = self.PAfusion(info['product'], info['av'],
                                     hyperedges['product_aspect'])
            hyper_PA_av_node = hyper_PA[:Na, :]
            hyper_PA_p_node = hyper_PA[Na:, :]
            hyper_CPA = self.CPAfusion(info['product'], info['av'], info['category'],
                                       hyperedges['category_product_aspect'],
                                       hyperedges['product_aspect'])
            hyper_CPA_p_node = hyper_CPA[:Np, :]
            hyper_CPA_c_node = hyper_CPA[Np:Np + Nc]
            hyper_CPA_av_node = hyper_CPA[-Na:]
            out_p = weighted_average([hyper_PA_p_node, hyper_CPA_p_node], [0.5, 0.5])
            out_av = weighted_average([hyper_PA_av_node, hyper_CPA_av_node], [0.5, 0.5])
            x_dict = {'product': out_p, 'category': hyper_CPA_c_node, 'av': out_av}

        elif hyperedge_type == 'all':
            also_view_out = self.conv_hyper(info['product'], hyperedges['also_view'])
            also_buy_out = self.conv_hyper(info['product'], hyperedges['also_buy'])
            hyper_PA = self.PAfusion(info['product'], info['av'],
                                     hyperedges['product_aspect'])
            hyper_PA_av_node = hyper_PA[:Na, :]
            hyper_PA_p_node = hyper_PA[Na:, :]
            hyper_CPA = self.CPAfusion(info['product'], info['av'], info['category'],
                                       hyperedges['category_product_aspect'],
                                       hyperedges['product_aspect'])
            hyper_CPA_p_node = hyper_CPA[:Np, :]
            hyper_CPA_c_node = hyper_CPA[Np:Np + Nc]
            hyper_CPA_av_node = hyper_CPA[-Na:]
            out_p = weighted_average(
                [also_view_out, also_buy_out, hyper_PA_p_node, hyper_CPA_p_node],
                [0.4, 0.4, 0.1, 0.1])
            out_av = weighted_average([hyper_PA_av_node, hyper_CPA_av_node], [0.5, 0.5])
            x_dict = {'product': out_p, 'category': hyper_CPA_c_node, 'av': out_av}

        else:
            print('Specify the hyperedge_type.')
            x_dict = {'product': info['product'], 'category': info['category'],
                      'av': info['av']}
        return x_dict


# ----------------------------------------------------------------------------- #
# Demo / smoke test
# ----------------------------------------------------------------------------- #
if __name__ == "__main__":
    in_ch, out_ch = 32, 16
    Np, Nc, Na = 6, 3, 5

    key = jax.random.PRNGKey(0)
    kp, kc, ka, km = jax.random.split(key, 4)
    info = {
        'product': jax.random.normal(kp, (Np, in_ch), jnp.float32),
        'category': jax.random.normal(kc, (Nc, in_ch), jnp.float32),
        'av': jax.random.normal(ka, (Na, in_ch), jnp.float32),
    }
    hyperedges = {
        # row 0 = node index, row 1 = hyperedge index
        'also_view': np.array([[0, 1, 2, 3, 4, 5, 0, 2],
                               [0, 0, 1, 1, 2, 2, 2, 0]], dtype=np.int64),
        'also_buy': np.array([[0, 1, 1, 2, 3, 4, 5, 5],
                              [0, 0, 1, 1, 1, 2, 2, 0]], dtype=np.int64),
        # av-node index / product(=edge) index; every product has >=1 aspect
        'product_aspect': np.array([[0, 1, 2, 3, 4, 0, 1, 2, 3, 4, 0, 1],
                                    [0, 0, 1, 1, 2, 2, 3, 3, 4, 4, 5, 5]],
                                   dtype=np.int64),
        # product index / category(=edge) index
        'category_product_aspect': np.array([[0, 1, 2, 3, 4, 5],
                                             [0, 0, 1, 1, 2, 2]], dtype=np.int64),
    }

    model = HypergraphPallas(in_ch, out_ch, km)

    for htype in ('user', 'inventory', 'all'):
        x_dict = model.forward(info, hyperedges, htype)
        x_dict = jax.tree_util.tree_map(jax.block_until_ready, x_dict)

    assert x_dict['product'].shape == (Np, out_ch)
    assert x_dict['category'].shape == (Nc, out_ch)
    assert x_dict['av'].shape == (Na, out_ch)
    print("KERNEL_OK")
</pallas_src>

<mosaic_0001>
module attributes {stable_mosaic.version = 11 : i64} {
  func.func @_hconv_kernel(%arg0: i32, %arg1: i32, %arg2: memref<8x128xbf16, #tpu.memory_space<vmem>>, %arg3: memref<8x128xbf16, #tpu.memory_space<vmem>>, %arg4: memref<128x128xbf16, #tpu.memory_space<vmem>>, %arg5: memref<8x1xf32, #tpu.memory_space<vmem>>, %arg6: memref<128x1xf32, #tpu.memory_space<vmem>>, %arg7: memref<1x128xf32, #tpu.memory_space<vmem>>, %arg8: memref<8x128xf32, #tpu.memory_space<vmem>>, %arg9: memref<128x128xf32, #tpu.memory_space<vmem>>) attributes {dimension_semantics = [#tpu.dimension_semantics<arbitrary>, #tpu.dimension_semantics<arbitrary>], iteration_bounds = array<i64: 2, 1>, scalar_prefetch = 0 : i64, scratch_operands = 1 : i64, tpu.core_type = #tpu.core_type<tc>, window_params = [{transform_indices = @transform_0, window_bounds = array<i64: 8, 128>}, {transform_indices = @transform_1, window_bounds = array<i64: 8, 128>}, {pipeline_mode = #tpu.pipeline_mode<synchronous>, transform_indices = @transform_2, window_bounds = array<i64: 128, 128>}, {transform_indices = @transform_3, window_bounds = array<i64: 8, 1>}, {pipeline_mode = #tpu.pipeline_mode<synchronous>, transform_indices = @transform_4, window_bounds = array<i64: 128, 1>}, {pipeline_mode = #tpu.pipeline_mode<synchronous>, transform_indices = @transform_5, window_bounds = array<i64: 1, 128>}, {transform_indices = @transform_6, window_bounds = array<i64: 8, 128>}]} {
    %c0_i32 = arith.constant 0 : i32
    %0 = arith.cmpi eq, %arg0, %c0_i32 : i32
    %c0_i32_0 = arith.constant 0 : i32
    %1 = arith.cmpi eq, %arg1, %c0_i32_0 : i32
    %2 = arith.andi %0, %1 : i1
    %3 = arith.extui %2 : i1 to i32
    %c0_i32_1 = arith.constant 0 : i32
    %4 = arith.cmpi ne, %3, %c0_i32_1 : i32
    scf.if %4 {
      %cst = arith.constant 0.000000e+00 : f32
      %11 = vector.broadcast %cst : f32 to vector<128x128xf32>
      %c0 = arith.constant 0 : index
      %c0_5 = arith.constant 0 : index
      %12 = vector.load %arg9[%c0, %c0_5] : memref<128x128xf32, #tpu.memory_space<vmem>>, vector<128x128xf32>
      tpu.vector_store %arg9[%c0, %c0_5], %11 {strides = array<i32>} : memref<128x128xf32, #tpu.memory_space<vmem>>, vector<128x128xf32>,
    } else {
    }
    %c0_i32_2 = arith.constant 0 : i32
    %5 = arith.cmpi eq, %arg0, %c0_i32_2 : i32
    %6 = arith.extui %5 : i1 to i32
    %c0_i32_3 = arith.constant 0 : i32
    %7 = arith.cmpi ne, %6, %c0_i32_3 : i32
    scf.if %7 {
      %c0 = arith.constant 0 : index
      %c0_5 = arith.constant 0 : index
      %11 = vector.load %arg2[%c0, %c0_5] : memref<8x128xbf16, #tpu.memory_space<vmem>>, vector<8x128xbf16>
      %c0_6 = arith.constant 0 : index
      %c0_7 = arith.constant 0 : index
      %12 = vector.load %arg4[%c0_6, %c0_7] : memref<128x128xbf16, #tpu.memory_space<vmem>>, vector<128x128xbf16>
      %cst = arith.constant dense<0.000000e+00> : vector<8x128xf32>
      %13 = tpu.matmul %11, %12, %cst {dimension_numbers = #tpu.dot_dimension_numbers<[1], [0], [0], [1], [0, 0, 1, 1], [], []>} : vector<8x128xbf16>, vector<128x128xbf16>, vector<8x128xf32> -> vector<8x128xf32>
      %c0_8 = arith.constant 0 : index
      %c0_9 = arith.constant 0 : index
      %14 = vector.load %arg9[%c0_8, %c0_9] : memref<128x128xf32, #tpu.memory_space<vmem>>, vector<128x128xf32>
      %c0_10 = arith.constant 0 : index
      %c0_11 = arith.constant 0 : index
      %15 = vector.load %arg3[%c0_10, %c0_11] : memref<8x128xbf16, #tpu.memory_space<vmem>>, vector<8x128xbf16>
      %16 = arith.truncf %13 : vector<8x128xf32> to vector<8x128xbf16>
      %cst_12 = arith.constant dense<0.000000e+00> : vector<128x128xf32>
      %17 = tpu.matmul %15, %16, %cst_12 {dimension_numbers = #tpu.dot_dimension_numbers<[0], [0], [1], [1], [0, 1, 1, 1], [], []>} : vector<8x128xbf16>, vector<8x128xbf16>, vector<128x128xf32> -> vector<128x128xf32>
      %18 = arith.addf %14, %17 : vector<128x128xf32>
      %c0_13 = arith.constant 0 : index
      %c0_14 = arith.constant 0 : index
      %19 = vector.load %arg9[%c0_13, %c0_14] : memref<128x128xf32, #tpu.memory_space<vmem>>, vector<128x128xf32>
      tpu.vector_store %arg9[%c0_13, %c0_14], %18 {strides = array<i32>} : memref<128x128xf32, #tpu.memory_space<vmem>>, vector<128x128xf32>,
    } else {
    }
    %c1_i32 = arith.constant 1 : i32
    %8 = arith.cmpi eq, %arg0, %c1_i32 : i32
    %9 = arith.extui %8 : i1 to i32
    %c0_i32_4 = arith.constant 0 : i32
    %10 = arith.cmpi ne, %9, %c0_i32_4 : i32
    scf.if %10 {
      %c0_i32_5 = arith.constant 0 : i32
      %11 = arith.cmpi eq, %arg1, %c0_i32_5 : i32
      %12 = arith.extui %11 : i1 to i32
      %c0_i32_6 = arith.constant 0 : i32
      %13 = arith.cmpi ne, %12, %c0_i32_6 : i32
      scf.if %13 {
        %c0_16 = arith.constant 0 : index
        %c0_17 = arith.constant 0 : index
        %25 = vector.load %arg9[%c0_16, %c0_17] : memref<128x128xf32, #tpu.memory_space<vmem>>, vector<128x128xf32>
        %c0_18 = arith.constant 0 : index
        %c0_19 = arith.constant 0 : index
        %26 = vector.load %arg6[%c0_18, %c0_19] : memref<128x1xf32, #tpu.memory_space<vmem>>, vector<128x1xf32>
        %27 = vector.broadcast %26 : vector<128x1xf32> to vector<128x128xf32>
        %28 = arith.mulf %25, %27 : vector<128x128xf32>
        %c0_20 = arith.constant 0 : index
        %c0_21 = arith.constant 0 : index
        %29 = vector.load %arg9[%c0_20, %c0_21] : memref<128x128xf32, #tpu.memory_space<vmem>>, vector<128x128xf32>
        tpu.vector_store %arg9[%c0_20, %c0_21], %28 {strides = array<i32>} : memref<128x128xf32, #tpu.memory_space<vmem>>, vector<128x128xf32>,
      } else {
      }
      %c0 = arith.constant 0 : index
      %c0_7 = arith.constant 0 : index
      %14 = vector.load %arg3[%c0, %c0_7] : memref<8x128xbf16, #tpu.memory_space<vmem>>, vector<8x128xbf16>
      %c0_8 = arith.constant 0 : index
      %c0_9 = arith.constant 0 : index
      %15 = vector.load %arg9[%c0_8, %c0_9] : memref<128x128xf32, #tpu.memory_space<vmem>>, vector<128x128xf32>
      %16 = arith.truncf %15 : vector<128x128xf32> to vector<128x128xbf16>
      %cst = arith.constant dense<0.000000e+00> : vector<8x128xf32>
      %17 = tpu.matmul %14, %16, %cst {dimension_numbers = #tpu.dot_dimension_numbers<[1], [0], [0], [1], [0, 0, 1, 1], [], []>} : vector<8x128xbf16>, vector<128x128xbf16>, vector<8x128xf32> -> vector<8x128xf32>
      %c0_10 = arith.constant 0 : index
      %c0_11 = arith.constant 0 : index
      %18 = vector.load %arg5[%c0_10, %c0_11] : memref<8x1xf32, #tpu.memory_space<vmem>>, vector<8x1xf32>
      %19 = vector.broadcast %18 : vector<8x1xf32> to vector<8x128xf32>
      %20 = arith.mulf %17, %19 : vector<8x128xf32>
      %c0_12 = arith.constant 0 : index
      %c0_13 = arith.constant 0 : index
      %21 = vector.load %arg7[%c0_12, %c0_13] : memref<1x128xf32, #tpu.memory_space<vmem>>, vector<1x128xf32>
      %22 = vector.broadcast %21 : vector<1x128xf32> to vector<8x128xf32>
      %23 = arith.addf %20, %22 : vector<8x128xf32>
      %c0_14 = arith.constant 0 : index
      %c0_15 = arith.constant 0 : index
      %24 = vector.load %arg8[%c0_14, %c0_15] : memref<8x128xf32, #tpu.memory_space<vmem>>, vector<8x128xf32>
      tpu.vector_store %arg8[%c0_14, %c0_15], %23 {strides = array<i32>} : memref<8x128xf32, #tpu.memory_space<vmem>>, vector<8x128xf32>,
    } else {
    }
    return
  }
  func.func @transform_0(%arg0: i32, %arg1: i32) -> (i32, i32) {
    %c1_i32 = arith.constant 1 : i32
    %0 = arith.subi %c1_i32, %arg0 : i32
    %1 = arith.muli %0, %arg1 : i32
    %c0_i32 = arith.constant 0 : i32
    %c0_i32_0 = arith.constant 0 : i32
    return %1, %c0_i32 : i32, i32
  }
  func.func @transform_1(%arg0: i32, %arg1: i32) -> (i32, i32) {
    %c0_i32 = arith.constant 0 : i32
    %c0_i32_0 = arith.constant 0 : i32
    return %arg1, %c0_i32 : i32, i32
  }
  func.func @transform_2(%arg0: i32, %arg1: i32) -> (i32, i32) {
    %c0_i32 = arith.constant 0 : i32
    %c0_i32_0 = arith.constant 0 : i32
    %c0_i32_1 = arith.constant 0 : i32
    return %c0_i32, %c0_i32_0 : i32, i32
  }
  func.func @transform_3(%arg0: i32, %arg1: i32) -> (i32, i32) {
    %0 = arith.muli %arg0, %arg1 : i32
    %c0_i32 = arith.constant 0 : i32
    %c0_i32_0 = arith.constant 0 : i32
    return %0, %c0_i32 : i32, i32
  }
  func.func @transform_4(%arg0: i32, %arg1: i32) -> (i32, i32) {
    %c0_i32 = arith.constant 0 : i32
    %c0_i32_0 = arith.constant 0 : i32
    %c0_i32_1 = arith.constant 0 : i32
    return %c0_i32, %c0_i32_0 : i32, i32
  }
  func.func @transform_5(%arg0: i32, %arg1: i32) -> (i32, i32) {
    %c0_i32 = arith.constant 0 : i32
    %c0_i32_0 = arith.constant 0 : i32
    %c0_i32_1 = arith.constant 0 : i32
    return %c0_i32, %c0_i32_0 : i32, i32
  }
  func.func @transform_6(%arg0: i32, %arg1: i32) -> (i32, i32) {
    %0 = arith.muli %arg0, %arg1 : i32
    %c0_i32 = arith.constant 0 : i32
    %c0_i32_0 = arith.constant 0 : i32
    return %0, %c0_i32 : i32, i32
  }
}

</mosaic_0001>

<bundles_post_ra>
// kernel: _hconv_call.1
= control target key start
LH: loop header
LB: loop body
LE: loop exit
PB: predicated region body
PF: predicated region fallthrough
CT: control target
= control target key end

     0   :  { %11 = vsyncpa [#allocation4], 0  ;;  %s1896_s0 = inlined_call_operand.hbm [shape: bf16[8,128], index: 0, kind: input, shape index: {}]   ;;  %s1897_s1 = inlined_call_operand.hbm [shape: bf16[8,128], index: 1, kind: input, shape index: {}]   ;;  %s1898_s2 = inlined_call_operand.hbm [shape: bf16[128,128], index: 2, kind: input, shape index: {}]   ;;  %s1899_s3 = inlined_call_operand.hbm [shape: f32[8,1], index: 3, kind: input, shape index: {}]   ;;  %s1900_s4 = inlined_call_operand.hbm [shape: f32[128,1], index: 4, kind: input, shape index: {}]   ;;  %s1901_s5 = inlined_call_operand.hbm [shape: f32[1,128], index: 5, kind: input, shape index: {}]   ;;  %s1902_s6 = inlined_call_operand.hbm [shape: f32[8,128], index: 6, kind: output, shape index: {}]  }
   0x1   :  { %13 = vsyncpa [#allocation4 + $0x1], 0 }
   0x2   :  { %14 = vsyncpa [#allocation7], 0 }
   0x3   :  { %15 = vsyncpa [#allocation10], 0 }
   0x4   :  { %17 = vsyncpa [#allocation10 + $0x1], 0 }
   0x5   :  { %18 = vsyncpa [#allocation13], 0 }
   0x6   :  { %19 = vsyncpa [#allocation5], 0 }
   0x7   :  { %21 = vsyncpa [#allocation5 + $0x1], 0  ;;  %s1645_s21 = smov 0   ;;  %s1647_s22 = smov 0  }
   0x8   :  { %s1649_s23 = smov 0  }
   0x9 LB: > { %s1661_s24 = sadd.s32 4294967295, %s1591_s23   ;;  %s1104_s25 = sadd.s32 4294967294, %s1591_s23   ;;  %s1591_s23 = sphi %s1649_s23, %s27_s23   ;;  %s1587_s22 = sphi %s1647_s22, %s1924_s22   ;;  %s1583_s21 = sphi %s1645_s21, %s1923_s21  }
   0xa   : > { %s39_s26 = sadd.s32 1, %s1587_s22  ;;  %p1105_p0 = scmp.ge.s32.totalorder %s1591_s23, 1 }
   0xb   : > { %p41_p1 = scmp.ge.s32.totalorder %s39_s26, 2  ;;  %p219_p2 = scmp.lt.s32.totalorder %s1591_s23, 3 }
   0xc   : > { %p1903_p3 = scmp.eq.s32.totalorder %s1661_s24, 0  ;;  %s1593_s28 = smov [#allocation6]  }
   0xd   : > { %s1926_s26 = smov (%p41_p1, %s39_s26), 0  ;;  %p1670_p4 = pnand %p1105_p0, %p219_p2 }
   0xe   : > { %s234_s29 = sshll.u32 %s1593_s28, 4  ;;  %s1594_s7 = smov [#allocation11]   ;;  %s235_s29 = int_to_ptr.vmem [resolvable:$true] %s234_s29 }
   0xf   : > { %s1905_s27 = scalar_select %p1670_p4, 1, 0 }
  0x10   : > { %p1259_p6 = pneg %p1670_p4  ;;  %s257_s8 = sshll.u32 %s1594_s7, 4  ;;  %s1683_s8 = int_to_ptr.vmem [resolvable:$true] %s257_s8 }
  0x11   : > { %s1351_s11 = scalar_lea.hbm %s1897_s1, 64 }
  0x12   : > { %p1679_p7 = pnand %p1903_p3, %p1259_p6  ;;  %p1352_p8 = scmp.ne.s32.totalorder %s1897_s1, %s1351_s11 }
  0x13   : > { %p1358_p12 = scmp.lt.u32.totalorder %s1351_s11, %s1897_s1 }
  0x14   : > { %p1693_p9 = pneg %p1679_p7 }
  0x16   : > { %p1354_p10 = pnand %p1693_p9, %p1352_p8 }
  0x18   : > { %p1355_p11 = pneg %p1354_p10 }
  0x1a   : > { %p1360_p13 = pnand %p1358_p12, %p1355_p11 }
  0x1c   : > { %1363 = shalt.err (!%p1360_p13)
}
  0x1d   : > { %s1364_s17 = scalar_lea.vmem %s235_s29, 64  ;;  %p1372_p6 = scmp.lt.s32.totalorder %s235_s29, %s235_s29 }
  0x1e   : > { %p1365_p0 = scmp.ne.s32.totalorder %s235_s29, %s1364_s17  ;;  %p1373_p5 = scmp.lt.s32.totalorder %s1364_s17, %s1364_s17 }
  0x20   : > { %p1367_p1 = pnand %p1365_p0, %p1693_p9  ;;  %p1374_p3 = por %p1373_p5, %p1372_p6 }
  0x22   : > { %p1368_p2 = pneg %p1367_p1 }
  0x24   : > { %p1375_p4 = pnand %p1374_p3, %p1368_p2 }
  0x26   : > { %1378 = shalt.err (!%p1375_p4)
}
  0x27   : > { %1262 = dma.hbm_to_vmem [thread:$0]  (!%p1679_p7), %s1897_s1, 64, %s235_s29, [#allocation7]  }
  0x28   : > { %s1379_s7 = scalar_lea.hbm %s1900_s4, 2048 }
  0x29   : > { %p1380_p8 = scmp.ne.s32.totalorder %s1900_s4, %s1379_s7  ;;  %p1386_p3 = scmp.lt.u32.totalorder %s1379_s7, %s1900_s4 }
  0x2b   : > { %p1382_p10 = pnand %p1380_p8, %p1693_p9 }
  0x2d   : > { %p1383_p5 = pneg %p1382_p10 }
  0x2f   : > { %p1388_p4 = pnand %p1386_p3, %p1383_p5 }
  0x31   : > { %1391 = shalt.err (!%p1388_p4)
}
  0x32   : > { %s1392_s29 = scalar_lea.vmem %s1683_s8, 2048  ;;  %p1400_p0 = scmp.lt.s32.totalorder %s1683_s8, %s1683_s8 }
  0x33   : > { %p1393_p11 = scmp.ne.s32.totalorder %s1683_s8, %s1392_s29  ;;  %p1401_p1 = scmp.lt.s32.totalorder %s1392_s29, %s1392_s29 }
  0x35   : > { %p1395_p12 = pnand %p1393_p11, %p1693_p9  ;;  %p1402_p2 = por %p1401_p1, %p1400_p0 }
  0x37   : > { %p1396_p13 = pneg %p1395_p12 }
  0x39   : > { %p1403_p6 = pnand %p1402_p2, %p1396_p13 }
  0x3b   : > { %1406 = shalt.err (!%p1403_p6)
}
  0x3c   : > { %s1595_s13 = smov 128   ;;  %s1596_s15 = smov 8  }
  0x3d   : > { %1268 = dma.hbm_to_vmem [thread:$0]  (!%p1679_p7), %s1900_s4, 2048, %s1683_s8, [#allocation10], %s1595_s13, %s1595_s13, %s1596_s15  }
  0x3e   : > { %s1597_s18 = smov [#allocation8]   ;;  %s1407_s7 = scalar_lea.hbm %s1898_s2, 1024 }
  0x3f   : > { %s244_s19 = sshll.u32 %s1597_s18, 4  ;;  %p1408_p8 = scmp.ne.s32.totalorder %s1898_s2, %s1407_s7  ;;  %s245_s19 = int_to_ptr.vmem [resolvable:$true] %s244_s19 }
  0x40   : > { %p1414_p3 = scmp.lt.u32.totalorder %s1407_s7, %s1898_s2 }
  0x41   : > { %p1410_p10 = pnand %p1408_p8, %p1693_p9 }
  0x43   : > { %p1411_p5 = pneg %p1410_p10 }
  0x45   : > { %p1416_p4 = pnand %p1414_p3, %p1411_p5 }
  0x47   : > { %1419 = shalt.err (!%p1416_p4)
}
  0x48   : > { %s1420_s8 = scalar_lea.vmem %s245_s19, 1024  ;;  %p1428_p0 = scmp.lt.s32.totalorder %s245_s19, %s245_s19 }
  0x49   : > { %p1421_p11 = scmp.ne.s32.totalorder %s245_s19, %s1420_s8  ;;  %p1429_p1 = scmp.lt.s32.totalorder %s1420_s8, %s1420_s8 }
  0x4b   : > { %p1423_p12 = pnand %p1421_p11, %p1693_p9  ;;  %p1430_p2 = por %p1429_p1, %p1428_p0 }
  0x4d   : > { %p1424_p13 = pneg %p1423_p12 }
  0x4f   : > { %p1431_p6 = pnand %p1430_p2, %p1424_p13 }
  0x51   : > { %1434 = shalt.err (!%p1431_p6)
}
  0x52   : > { %s1598_s29 = smov 64   ;;  %s1599_s13 = smov 4  }
  0x53   : > { %1265 = dma.hbm_to_vmem [thread:$0]  (!%p1679_p7), %s1898_s2, 1024, %s245_s19, [#allocation7], %s1598_s29, %s1598_s29, %s1599_s13  }
  0x54   : > { %s1600_s17 = smov [#allocation12]   ;;  %s1435_s7 = scalar_lea.hbm %s1901_s5, 16 }
  0x55   : > { %s271_s18 = sshll.u32 %s1600_s17, 4  ;;  %p1436_p5 = scmp.ne.s32.totalorder %s1901_s5, %s1435_s7  ;;  %s272_s18 = int_to_ptr.vmem [resolvable:$true] %s271_s18 }
  0x56   : > { %p1442_p11 = scmp.lt.u32.totalorder %s1435_s7, %s1901_s5 }
  0x57   : > { %p1438_p3 = pnand %p1436_p5, %p1693_p9 }
  0x59   : > { %p1439_p4 = pneg %p1438_p3 }
  0x5b   : > { %p1444_p12 = pnand %p1442_p11, %p1439_p4 }
  0x5d   : > { %1447 = shalt.err (!%p1444_p12)
}
  0x5e   : > { %s1448_s19 = scalar_lea.vmem %s272_s18, 16  ;;  %s1455_s8 = scalar_lea.vmem %s272_s18, 32 }
  0x5f   : > { %p1449_p13 = scmp.ne.s32.totalorder %s272_s18, %s1448_s19  ;;  %p1456_p2 = scmp.lt.s32.totalorder %s272_s18, %s272_s18 }
  0x60   : > { %p1457_p6 = scmp.lt.s32.totalorder %s1455_s8, %s1448_s19 }
  0x61   : > { %p1451_p0 = pnand %p1449_p13, %p1693_p9 }
  0x62   : > { %p1458_p10 = por %p1457_p6, %p1456_p2 }
  0x63   : > { %p1452_p1 = pneg %p1451_p0 }
  0x65   : > { %p1459_p8 = pnand %p1458_p10, %p1452_p1 }
  0x67   : > { %1462 = shalt.err (!%p1459_p8)
}
  0x68   : > { %1271 = dma.hbm_to_vmem [thread:$0]  (!%p1679_p7), %s1901_s5, 16, %s272_s18, [#allocation13]  }
  0x69   : > { %p1908_p5 = scmp.lt.s32.totalorder %s1591_s23, 2  ;;  %p1909_p3 = scmp.eq.s32.totalorder %s1591_s23, 0 }
  0x6a   : > { %s1601_s15 = smov [#allocation3]   ;;  %s302_s17 = sand.u32 1, %s1591_s23  }
  0x6b   : > { %p1774_p4 = pnand %p1909_p3, %p1908_p5  ;;  %s295_s16 = sshll.u32 %s1601_s15, 4  ;;  %s296_s16 = int_to_ptr.vmem [resolvable:$true] %s295_s16 }
  0x6c   : > { %s1463_s28 = scalar_lea.hbm %s1896_s0, 64 }
  0x6d   : > { %p1464_p7 = scmp.ne.s32.totalorder %s1896_s0, %s1463_s28  ;;  %p1465_p9 = pneg %p1774_p4 }
  0x6e   : > { %p1470_p11 = scmp.lt.u32.totalorder %s1463_s28, %s1896_s0 }
  0x6f   : > { %p1466_p8 = pnand %p1465_p9, %p1464_p7 }
  0x71   : > { %p1467_p10 = pneg %p1466_p8 }
  0x73   : > { %p1472_p12 = pnand %p1470_p11, %p1467_p10 }
  0x75   : > { %1475 = shalt.err (!%p1472_p12)
}
  0x76   : > { %s1476_s11 = scalar_lea.vmem %s296_s16, 64  ;;  %s1483_s12 = scalar_lea.vmem %s296_s16, 128 }
  0x77   : > { %p1477_p13 = scmp.ne.s32.totalorder %s296_s16, %s1476_s11  ;;  %p1484_p2 = scmp.lt.s32.totalorder %s296_s16, %s296_s16 }
  0x78   : > { %p1485_p6 = scmp.lt.s32.totalorder %s1483_s12, %s1476_s11 }
  0x79   : > { %p1479_p0 = pnand %p1477_p13, %p1465_p9 }
  0x7a   : > { %p1486_p5 = por %p1485_p6, %p1484_p2 }
  0x7b   : > { %p1480_p1 = pneg %p1479_p0 }
  0x7d   : > { %p1487_p3 = pnand %p1486_p5, %p1480_p1 }
  0x7f   : > { %1490 = shalt.err (!%p1487_p3)
}
  0x80   : > { %1275 = dma.hbm_to_vmem [thread:$0]  (!%p1774_p4), %s1896_s0, 64, %s296_s16, [#allocation4]  }
  0x81   : > { %s1602_s29 = smov [#allocation9]   ;;  %s303_s15 = scalar_lea.sflag [#allocation10], %s302_s17 }
  0x82   : > { %s314_s13 = sshll.u32 %s1602_s29, 4  ;;  %s1491_s28 = scalar_lea.hbm %s1899_s3, 128  ;;  %s315_s13 = int_to_ptr.vmem [resolvable:$true] %s314_s13 }
  0x83   : > { %p1492_p7 = scmp.ne.s32.totalorder %s1899_s3, %s1491_s28  ;;  %p1498_p11 = scmp.lt.u32.totalorder %s1491_s28, %s1899_s3 }
  0x85   : > { %p1494_p8 = pnand %p1492_p7, %p1465_p9 }
  0x87   : > { %p1495_p10 = pneg %p1494_p8 }
  0x89   : > { %p1500_p12 = pnand %p1498_p11, %p1495_p10 }
  0x8b   : > { %1503 = shalt.err (!%p1500_p12)
}
  0x8c   : > { %s1504_s16 = scalar_lea.vmem %s315_s13, 128  ;;  %s1511_s17 = scalar_lea.vmem %s315_s13, 256 }
  0x8d   : > { %p1505_p13 = scmp.ne.s32.totalorder %s315_s13, %s1504_s16  ;;  %p1512_p2 = scmp.lt.s32.totalorder %s315_s13, %s315_s13 }
  0x8e   : > { %p1513_p6 = scmp.lt.s32.totalorder %s1511_s17, %s1504_s16 }
  0x8f   : > { %p1507_p0 = pnand %p1505_p13, %p1465_p9 }
  0x90   : > { %p1514_p5 = por %p1513_p6, %p1512_p2 }
  0x91   : > { %p1508_p1 = pneg %p1507_p0 }
  0x93   : > { %p1515_p3 = pnand %p1514_p5, %p1508_p1 }
  0x95   : > { %1518 = shalt.err (!%p1515_p3)
}
  0x96   : > { %1278 = dma.hbm_to_vmem [thread:$0]  (!%p1774_p4), %s1899_s3, 128, %s315_s13, %s303_s15  }
  0x97   : > { %p1911_p7 = scmp.ne.s32.totalorder %s1905_s27, 0 }
  0x98   : > { %p1912_p8 = scmp.eq.s32.totalorder (!%p1911_p7), %s1661_s24, 0 }
  0x99   : > { %323 = sbr.rel (%p1911_p7) target bundleno = 1088 (0x440), region = 44 }
  0xa0   : > { %1558 = dma.done.wait (%p1912_p8), [#allocation4], 64   ;;  %p1913_p9 = pmov %p1912_p8 }
  0xa1   : > { %p1914_p10 = pmov %p1912_p8 }
  0xa2   : > { %1560 = vsyncadd (%p1913_p9), [#allocation4], 4294967232 }
  0xa3   : > { %1562 = dma.done.wait (%p1914_p10), [#allocation7], 1088   ;;  %p1915_p11 = pmov %p1912_p8 }
  0xa4   : > { %s342_s14 = sand.u32 1, %s1661_s24   ;;  %p1916_p4 = pmov %p1912_p8 }
  0xa5   : > { %1564 = vsyncadd (%p1915_p11), [#allocation7], 4294966208  ;;  %s343_s19 = scalar_lea.sflag [#allocation10], %s342_s14 }
  0xa6   : > { %1566 = dma.done.wait (%p1916_p4), %s343_s19, 128   ;;  %p1917_p12 = pmov %p1916_p4 }
  0xa7   : > { %p1918_p13 = pmov %p1916_p4 }
  0xa8   : > { %1568 = vsyncadd (%p1917_p12), %s343_s19, 4294967168 }
  0xa9   : > { %1570 = dma.done.wait (%p1918_p13), [#allocation10], 2048   ;;  %p1919_p0 = pmov %p1916_p4 }
  0xab   : > { %1572 = vsyncadd (%p1919_p0), [#allocation10], 4294965248  ;;  %p1920_p1 = pmov %p1919_p0 }
  0xac   : > { %p1921_p2 = pmov %p1919_p0 }
  0xad   : > { %1574 = dma.done.wait (%p1920_p1), [#allocation13], 16  }
  0xae   : > { %1576 = vsyncadd (%p1921_p2), [#allocation13], 4294967280  ;;  %p393_p6 = scmp.eq.s32.totalorder %s1583_s21, 0 }
  0xaf   : > { %v1603_v0 = vmov (%p393_p6), 0.0  }
  0xb0   : > { %398 = sbr.rel (!%p393_p6) target bundleno = 184 (0xb8), region = 72  ;;  %399 = vst [vmem:[#allocation2] sm:$0xff] (%p393_p6), %v1603_v0  ;;  %400 = vst [vmem:[#allocation2 + $0x8] sm:$0xff] (%p393_p6), %v1603_v0 }
  0xb1   : > { %401 = vst [vmem:[#allocation2 + $0x10] sm:$0xff] (%p393_p6), %v1603_v0  ;;  %402 = vst [vmem:[#allocation2 + $0x18] sm:$0xff] (%p393_p6), %v1603_v0 }
  0xb2   : > { %403 = vst [vmem:[#allocation2 + $0x20] sm:$0xff] (%p393_p6), %v1603_v0  ;;  %404 = vst [vmem:[#allocation2 + $0x28] sm:$0xff] (%p393_p6), %v1603_v0 }
  0xb3   : > { %405 = vst [vmem:[#allocation2 + $0x30] sm:$0xff] (%p393_p6), %v1603_v0  ;;  %406 = vst [vmem:[#allocation2 + $0x38] sm:$0xff] (%p393_p6), %v1603_v0 }
  0xb4   : > { %407 = vst [vmem:[#allocation2 + $0x40] sm:$0xff] (%p393_p6), %v1603_v0  ;;  %408 = vst [vmem:[#allocation2 + $0x48] sm:$0xff] (%p393_p6), %v1603_v0 }
  0xb5   : > { %409 = vst [vmem:[#allocation2 + $0x50] sm:$0xff] (%p393_p6), %v1603_v0  ;;  %410 = vst [vmem:[#allocation2 + $0x58] sm:$0xff] (%p393_p6), %v1603_v0 }
  0xb6   : > { %411 = vst [vmem:[#allocation2 + $0x60] sm:$0xff] (%p393_p6), %v1603_v0  ;;  %412 = vst [vmem:[#allocation2 + $0x68] sm:$0xff] (%p393_p6), %v1603_v0 }
  0xb7   : > { %413 = vst [vmem:[#allocation2 + $0x70] sm:$0xff] %v1603_v0  ;;  %414 = vst [vmem:[#allocation2 + $0x78] sm:$0xff] %v1603_v0 }
  0xb8 PF: > { %p1121_p5 = scmp.ne.s32.totalorder %s1583_s21, 0 }
  0xb9   : > { %v1341_v1 = vld [vmem:[#allocation8] sm:$0xff] (!%p1121_p5)   ;;  %v1604_v2 = vmov (!%p1121_p5), 0.0   ;;  %v1342_v3 = vld [vmem:[#allocation8 + $0x8] sm:$0xff] (!%p1121_p5)   ;;  %vm1605_vm0 = vmmov (!%p1121_p5), 0   ;;  %v1343_v4 = vld [vmem:[#allocation8 + $0x10] sm:$0xff] (!%p1121_p5)   ;;  %vm557_vm1 = vcmask (!%p1121_p5), 64512  }
  0xba   : > { %417 = sbr.rel (%p1121_p5) target bundleno = 678 (0x2a6), region = 76  ;;  %1172 = vmatprep.subr.bf16.mxu0 (!%p1121_p5), %v1604_v2  ;;  %1188 = vmatprep.mubr.msk.bf16.mxu0 (!%p1121_p5), %vm1605_vm0, %v1604_v2  ;;  %v539_v5 = vld [vmem:[#allocation6] sm:$0xf] (!%p1121_p5)  ;;  %v1345_v7 = vld [vmem:[#allocation8 + $0x20] sm:$0xff] (!%p1121_p5)   ;;  %v1346_v8 = vld [vmem:[#allocation8 + $0x28] sm:$0xff] (!%p1121_p5)   ;;  %vm582_vm2 = vcmask (!%p1121_p5), 1043456  }
  0xbb   : > { %1173 = vmatpush3.bf16.msra.mxu0 (!%p1121_p5), %v1341_v1  ;;  %541 = vxpose.xlu0.c.b16.start.end [1/1] (short) (!%p1121_p5), %v539_v5, 128  ;;  %v1344_v6 = vld [vmem:[#allocation8 + $0x18] sm:$0xff] (!%p1121_p5)   ;;  %v1347_v9 = vld [vmem:[#allocation8 + $0x30] sm:$0xff] (!%p1121_p5)   ;;  %v525_v26 = vld [vmem:[#allocation2 + $0x10] sm:$0xff] (!%p1121_p5) }
  0xbc   : > { %1174 = vmatprep.subr.bf16.mxu0 (!%p1121_p5), %v1604_v2  ;;  %v1348_v10 = vld [vmem:[#allocation8 + $0x38] sm:$0xff] (!%p1121_p5)   ;;  %v418_v11 = vld [vmem:[#allocation3] sm:$0xf] (!%p1121_p5)  ;;  %v526_v29 = vld [vmem:[#allocation2 + $0x18] sm:$0xff] (!%p1121_p5) }
  0xbd   : > { %v523_v27 = vld [vmem:[#allocation2] sm:$0xff] (!%p1121_p5)  ;;  %v524_v32 = vld [vmem:[#allocation2 + $0x8] sm:$0xff] (!%p1121_p5)  ;;  %v529_v38 = vld [vmem:[#allocation2 + $0x30] sm:$0xff] (!%p1121_p5) }
  0xbe   : > { %v527_v39 = vld [vmem:[#allocation2 + $0x20] sm:$0xff] (!%p1121_p5)  ;;  %v530_v41 = vld [vmem:[#allocation2 + $0x38] sm:$0xff] (!%p1121_p5)  ;;  %v528_v44 = vld [vmem:[#allocation2 + $0x28] sm:$0xff] (!%p1121_p5) }
  0xbf   : > { %1175 = vmatpush3.bf16.msra.mxu0 (!%p1121_p5), %v1342_v3  ;;  %v533_v50 = vld [vmem:[#allocation2 + $0x50] sm:$0xff] (!%p1121_p5)  ;;  %v531_v51 = vld [vmem:[#allocation2 + $0x40] sm:$0xff] (!%p1121_p5)  ;;  %v534_v53 = vld [vmem:[#allocation2 + $0x58] sm:$0xff] (!%p1121_p5) }
  0xc0   : > { %1176 = vmatprep.subr.bf16.mxu0 (!%p1121_p5), %v1604_v2  ;;  %v532_v56 = vld [vmem:[#allocation2 + $0x48] sm:$0xff] (!%p1121_p5)  ;;  %v537_v62 = vld [vmem:[#allocation2 + $0x70] sm:$0xff] (!%p1121_p5)  ;;  %v535_v63 = vld [vmem:[#allocation2 + $0x60] sm:$0xff] (!%p1121_p5) }
  0xc1   : > { %v538_v1 = vld [vmem:[#allocation2 + $0x78] sm:$0xff] }
  0xc3   : > { %1177 = vmatpush3.bf16.msra.mxu0 %v1343_v4  ;;  %v536_v4 = vld [vmem:[#allocation2 + $0x68] sm:$0xff] }
  0xc4   : > { %1178 = vmatprep.subr.bf16.mxu0 %v1604_v2 }
  0xc7   : > { %1179 = vmatpush3.bf16.msra.mxu0 %v1344_v6 }
  0xc8   : > { %1180 = vmatprep.subr.bf16.mxu0 %v1604_v2 }
  0xcb   : > { %1181 = vmatpush3.bf16.msra.mxu0 %v1345_v7 }
  0xcc   : > { %1182 = vmatprep.subr.bf16.mxu0 %v1604_v2 }
  0xcf   : > { %1183 = vmatpush3.bf16.msra.mxu0 %v1346_v8 }
  0xd0   : > { %1184 = vmatprep.subr.bf16.mxu0 %v1604_v2 }
  0xd3   : > { %1185 = vmatpush3.bf16.msra.mxu0 %v1347_v9 }
  0xd4   : > { %1186 = vmatprep.subr.bf16.mxu0 %v1604_v2 }
  0xd7   : > { %1187 = vmatpush3.bf16.msra.mxu0 %v1348_v10 }
  0xda   : > { %1189 = vmatmul.mubr.bf16.vlgmr.msra.gmra.mrb[0].mxu0 %v418_v11 }
 0x121   : > { %v549_v12 = vpop.trf.xlu0 }
 0x122   : > { %1194 = vmatprep.mubr.msk.bf16.mxu1 %vm557_vm1, %v549_v12 }
 0x125   : > { %v550_v13 = vpop.trf.xlu0 }
 0x129   : > { %v551_v14 = vpop.trf.xlu0 }
 0x12d   : > { %v552_v21 = vpop.trf.xlu0 }
 0x131   : > { %v553_v22 = vpop.trf.xlu0 }
 0x135   : > { %v554_v23 = vpop.trf.xlu0 }
 0x139   : > { %v555_v24 = vpop.trf.xlu0 }
 0x13d   : > { %v556_v25 = vpop.trf.xlu0 }
 0x1ad   : > { %v517_v15 = vpop.f32.mrb[0].mxu0 }
 0x1ae   : > { %v540_v16 = vpack.c.bf16 %v517_v15, %v517_v15  ;;  %v1190_v17 = vpop.f32.mrb[1].mxu0 }
 0x1af   : > { %v520_v18 = vpop.f32.mrb[2].mxu0 }
 0x1b0   : > { %v1191_v19 = vpop.f32.mrb[3].mxu0  ;;  %1230 = vmatprep.subr.msk.bf16.mxu1 %vm582_vm2, %v540_v16  ;;  %v584_v20 = vsel %vm582_vm2, %v540_v16, 0 }
 0x1b1   : > { %1193 = vmatpush3.bf16.msra.mxu1 %v584_v20 }
 0x1b4   : > { %1195 = vmatmul.mubr.msk.bf16.vlgmr.msra.gmra.mrb[0].mxu1 %vm557_vm1, %v550_v13 }
 0x1b5   : > { %1198 = vmatprep.mubr.msk.bf16.mxu1 %vm557_vm1, %v551_v14 }
 0x1bc   : > { %1199 = vmatmul.mubr.msk.bf16.gmra.mrb[4].mxu1 %vm557_vm1, %v552_v21 }
 0x1bd   : > { %1202 = vmatprep.mubr.msk.bf16.mxu1 %vm557_vm1, %v553_v22 }
 0x1c4   : > { %1203 = vmatmul.mubr.msk.bf16.gmra.mrb[8].mxu1 %vm557_vm1, %v554_v23 }
 0x1c5   : > { %1206 = vmatprep.mubr.msk.bf16.mxu1 %vm557_vm1, %v555_v24 }
 0x1cc   : > { %1207 = vmatmul.mubr.msk.bf16.gmra.mrb[12].mxu1 %vm557_vm1, %v556_v25 }
 0x287   : > { %v1196_v28 = vpop.f32.mrb[0].mxu1 }
 0x288   : > { %v685_v30 = vadd.f32 %v1196_v28, %v525_v26  ;;  %v620_v31 = vpop.f32.mrb[1].mxu1 }
 0x289   : > { %v683_v33 = vadd.f32 %v620_v31, %v523_v27  ;;  %v1197_v34 = vpop.f32.mrb[2].mxu1 }
 0x28a   : > { %701 = vst [vmem:[#allocation2 + $0x10] sm:$0xff] %v685_v30  ;;  %v686_v35 = vadd.f32 %v1197_v34, %v526_v29  ;;  %v623_v36 = vpop.f32.mrb[3].mxu1 }
 0x28b   : > { %699 = vst [vmem:[#allocation2] sm:$0xff] %v683_v33  ;;  %v684_v37 = vadd.f32 %v623_v36, %v524_v32 }
 0x28c   : > { %702 = vst [vmem:[#allocation2 + $0x18] sm:$0xff] %v686_v35 }
 0x28d   : > { %700 = vst [vmem:[#allocation2 + $0x8] sm:$0xff] %v684_v37 }
 0x28f   : > { %v1200_v40 = vpop.f32.mrb[4].mxu1 }
 0x290   : > { %v689_v42 = vadd.f32 %v1200_v40, %v529_v38  ;;  %v636_v43 = vpop.f32.mrb[5].mxu1 }
 0x291   : > { %v687_v45 = vadd.f32 %v636_v43, %v527_v39  ;;  %v1201_v46 = vpop.f32.mrb[6].mxu1 }
 0x292   : > { %705 = vst [vmem:[#allocation2 + $0x30] sm:$0xff] %v689_v42  ;;  %v690_v47 = vadd.f32 %v1201_v46, %v530_v41  ;;  %v639_v48 = vpop.f32.mrb[7].mxu1 }
 0x293   : > { %703 = vst [vmem:[#allocation2 + $0x20] sm:$0xff] %v687_v45  ;;  %v688_v49 = vadd.f32 %v639_v48, %v528_v44 }
 0x294   : > { %706 = vst [vmem:[#allocation2 + $0x38] sm:$0xff] %v690_v47 }
 0x295   : > { %704 = vst [vmem:[#allocation2 + $0x28] sm:$0xff] %v688_v49 }
 0x297   : > { %v1204_v52 = vpop.f32.mrb[8].mxu1 }
 0x298   : > { %v693_v54 = vadd.f32 %v1204_v52, %v533_v50  ;;  %v652_v55 = vpop.f32.mrb[9].mxu1 }
 0x299   : > { %v691_v57 = vadd.f32 %v652_v55, %v531_v51  ;;  %v1205_v58 = vpop.f32.mrb[10].mxu1 }
 0x29a   : > { %709 = vst [vmem:[#allocation2 + $0x50] sm:$0xff] %v693_v54  ;;  %v694_v59 = vadd.f32 %v1205_v58, %v534_v53  ;;  %v655_v60 = vpop.f32.mrb[11].mxu1 }
 0x29b   : > { %707 = vst [vmem:[#allocation2 + $0x40] sm:$0xff] %v691_v57  ;;  %v692_v61 = vadd.f32 %v655_v60, %v532_v56 }
 0x29c   : > { %710 = vst [vmem:[#allocation2 + $0x58] sm:$0xff] %v694_v59 }
 0x29d   : > { %708 = vst [vmem:[#allocation2 + $0x48] sm:$0xff] %v692_v61 }
 0x29f   : > { %v1208_v0 = vpop.f32.mrb[12].mxu1 }
 0x2a0   : > { %v697_v2 = vadd.f32 %v1208_v0, %v537_v62  ;;  %v668_v3 = vpop.f32.mrb[13].mxu1 }
 0x2a1   : > { %v695_v5 = vadd.f32 %v668_v3, %v535_v63  ;;  %v1209_v6 = vpop.f32.mrb[14].mxu1 }
 0x2a2   : > { %713 = vst [vmem:[#allocation2 + $0x70] sm:$0xff] %v697_v2  ;;  %v698_v7 = vadd.f32 %v1209_v6, %v538_v1  ;;  %v671_v8 = vpop.f32.mrb[15].mxu1 }
 0x2a3   : > { %711 = vst [vmem:[#allocation2 + $0x60] sm:$0xff] %v695_v5  ;;  %v696_v9 = vadd.f32 %v671_v8, %v536_v4 }
 0x2a4   : > { %714 = vst [vmem:[#allocation2 + $0x78] sm:$0xff] %v698_v7 }
 0x2a5   : > { %712 = vst [vmem:[#allocation2 + $0x68] sm:$0xff] %v696_v9 }
 0x2a6 PF: > { %p1138_p3 = scmp.ne.s32.totalorder %s1583_s21, 1 }
 0x2a7   : > { %v740_v10 = vld [vmem:[#allocation11 + $0x10] sm:$0xff] (!%p1138_p3)  ;;  %v738_v11 = vld [vmem:[#allocation11] sm:$0xff] (!%p1138_p3)  ;;  %v1606_v12 = vmov (!%p1138_p3), 0   ;;  %v741_v13 = vld [vmem:[#allocation11 + $0x18] sm:$0xff] (!%p1138_p3)  ;;  %v1607_v17 = vmov (!%p1138_p3), 0.0   ;;  %vm1608_vm3 = vmmov (!%p1138_p3), 0  }
 0x2a8   : > { %718 = sbr.rel (%p1138_p3) target bundleno = 1065 (0x429), region = 80  ;;  %1350 = vset.pattern.permute.xlu1 (!%p1138_p3), %v1606_v12  ;;  %1349 = vset.pattern.permute.xlu0 (!%p1138_p3), %v1606_v12  ;;  %v739_v14 = vld [vmem:[#allocation11 + $0x8] sm:$0xff] (!%p1138_p3)  ;;  %v742_v16 = vld [vmem:[#allocation11 + $0x20] sm:$0xff] (!%p1138_p3)  ;;  %v745_v18 = vld [vmem:[#allocation11 + $0x38] sm:$0xff] (!%p1138_p3) }
 0x2a9   : > { %766 = vperm.xlu1 (!%p1138_p3), %1350, %v740_v10   ;;  %756 = vperm.xlu0 (!%p1138_p3), %1349, %v738_v11   ;;  %v743_v15 = vld [vmem:[#allocation11 + $0x28] sm:$0xff] (!%p1138_p3)  ;;  %v744_v19 = vld [vmem:[#allocation11 + $0x30] sm:$0xff] (!%p1138_p3)  ;;  %v746_v21 = vld [vmem:[#allocation11 + $0x40] sm:$0xff] (!%p1138_p3) }
 0x2aa   : > { %1210 = vmatprep.subr.bf16.mxu0 (!%p1138_p3), %v1607_v17  ;;  %v747_v20 = vld [vmem:[#allocation11 + $0x48] sm:$0xff] (!%p1138_p3)  ;;  %v749_v22 = vld [vmem:[#allocation11 + $0x58] sm:$0xff] (!%p1138_p3)  ;;  %v748_v23 = vld [vmem:[#allocation11 + $0x50] sm:$0xff] (!%p1138_p3)  ;;  %1226 = vmatprep.mubr.msk.bf16.mxu0 (!%p1138_p3), %vm1608_vm3, %v1607_v17 }
 0x2ab   : > { %v751_v24 = vld [vmem:[#allocation11 + $0x68] sm:$0xff] (!%p1138_p3)  ;;  %v750_v25 = vld [vmem:[#allocation11 + $0x60] sm:$0xff] (!%p1138_p3)  ;;  %v753_v26 = vld [vmem:[#allocation11 + $0x78] sm:$0xff] (!%p1138_p3) }
 0x2ac   : > { %v752_v27 = vld [vmem:[#allocation11 + $0x70] sm:$0xff] (!%p1138_p3)  ;;  %v722_v30 = vld [vmem:[#allocation2] sm:$0xff] (!%p1138_p3)  ;;  %v725_v35 = vld [vmem:[#allocation2 + $0x18] sm:$0xff] (!%p1138_p3) }
 0x2ad   : > { %771 = vperm.xlu1 (!%p1138_p3), %1350, %v741_v13   ;;  %761 = vperm.xlu0 (!%p1138_p3), %1349, %v739_v14   ;;  %v931_v28 = vld [vmem:[#allocation9] sm:$0xff] (!%p1138_p3)  ;;  %v726_v42 = vld [vmem:[#allocation2 + $0x20] sm:$0xff] (!%p1138_p3)  ;;  %v729_v48 = vld [vmem:[#allocation2 + $0x38] sm:$0xff] (!%p1138_p3) }
 0x2ae   : > { %v724_v29 = vld [vmem:[#allocation2 + $0x10] sm:$0xff] (!%p1138_p3)  ;;  %v723_v36 = vld [vmem:[#allocation2 + $0x8] sm:$0xff] (!%p1138_p3)  ;;  %v730_v56 = vld [vmem:[#allocation2 + $0x40] sm:$0xff] (!%p1138_p3) }
 0x2af   : > { %v727_v41 = vld [vmem:[#allocation2 + $0x28] sm:$0xff]  ;;  %v728_v49 = vld [vmem:[#allocation2 + $0x30] sm:$0xff]  ;;  %v733_v62 = vld [vmem:[#allocation2 + $0x58] sm:$0xff] }
 0x2b0   : > { %v731_v55 = vld [vmem:[#allocation2 + $0x48] sm:$0xff]  ;;  %v732_v63 = vld [vmem:[#allocation2 + $0x50] sm:$0xff]  ;;  %v734_v6 = vld [vmem:[#allocation2 + $0x60] sm:$0xff] }
 0x2b1   : > { %781 = vperm.xlu1 %1350, %v743_v15   ;;  %776 = vperm.xlu0 %1349, %v742_v16   ;;  %v735_v5 = vld [vmem:[#allocation2 + $0x68] sm:$0xff]  ;;  %v737_v12 = vld [vmem:[#allocation2 + $0x78] sm:$0xff]  ;;  %v736_v13 = vld [vmem:[#allocation2 + $0x70] sm:$0xff] }
 0x2b5   : > { %791 = vperm.xlu1 %1350, %v745_v18   ;;  %786 = vperm.xlu0 %1349, %v744_v19  }
 0x2b9   : > { %801 = vperm.xlu1 %1350, %v747_v20   ;;  %796 = vperm.xlu0 %1349, %v746_v21  }
 0x2bd   : > { %811 = vperm.xlu1 %1350, %v749_v22   ;;  %806 = vperm.xlu0 %1349, %v748_v23   ;;  %v866_v22 = vld [vmem:[#allocation6] sm:$0xf] }
 0x2c1   : > { %821 = vperm.xlu1 %1350, %v751_v24   ;;  %816 = vperm.xlu0 %1349, %v750_v25   ;;  %v1139_v25 = vld [vmem:[#allocation12] ss:$0 sm:$0xff] }
 0x2c5   : > { %831 = vperm.xlu1 %1350, %v753_v26   ;;  %826 = vperm.xlu0 %1349, %v752_v27  }
 0x2c9   : > { %934 = vperm.xlu0 %1349, %v931_v28  }
 0x328   : > { %v767_v31 = vpop.permute.xlu1 %766  ;;  %v757_v32 = vpop.permute.xlu0 %756 }
 0x329   : > { %v836_v33 = vmul.f32 %v767_v31, %v724_v29  ;;  %v834_v34 = vmul.f32 %v757_v32, %v722_v30 }
 0x32b   : > { %852 = vst [vmem:[#allocation2 + $0x10] sm:$0xff] %v836_v33  ;;  %850 = vst [vmem:[#allocation2] sm:$0xff] %v834_v34 }
 0x32c   : > { %v772_v37 = vpop.permute.xlu1 %771  ;;  %v762_v38 = vpop.permute.xlu0 %761 }
 0x32d   : > { %v837_v39 = vmul.f32 %v772_v37, %v725_v35  ;;  %v835_v40 = vmul.f32 %v762_v38, %v723_v36 }
 0x32f   : > { %853 = vst [vmem:[#allocation2 + $0x18] sm:$0xff] %v837_v39  ;;  %851 = vst [vmem:[#allocation2 + $0x8] sm:$0xff] %v835_v40  ;;  %v883_v43 = vpack.c.bf16 %v835_v40, %v834_v34  ;;  %v884_v50 = vpack.c.bf16 %v837_v39, %v836_v33 }
 0x330   : > { %v782_v44 = vpop.permute.xlu1 %781  ;;  %v777_v45 = vpop.permute.xlu0 %776 }
 0x331   : > { %v839_v46 = vmul.f32 %v782_v44, %v727_v41  ;;  %v838_v47 = vmul.f32 %v777_v45, %v726_v42  ;;  %1211 = vmatpush3.bf16.msra.mxu0 %v883_v43 }
 0x332   : > { %1212 = vmatprep.subr.bf16.mxu0 %v1607_v17 }
 0x333   : > { %855 = vst [vmem:[#allocation2 + $0x28] sm:$0xff] %v839_v46  ;;  %854 = vst [vmem:[#allocation2 + $0x20] sm:$0xff] %v838_v47  ;;  %v885_v57 = vpack.c.bf16 %v839_v46, %v838_v47 }
 0x334   : > { %v792_v51 = vpop.permute.xlu1 %791  ;;  %v787_v52 = vpop.permute.xlu0 %786 }
 0x335   : > { %v841_v53 = vmul.f32 %v792_v51, %v729_v48  ;;  %v840_v54 = vmul.f32 %v787_v52, %v728_v49  ;;  %1213 = vmatpush3.bf16.msra.mxu0 %v884_v50 }
 0x336   : > { %1214 = vmatprep.subr.bf16.mxu0 %v1607_v17 }
 0x337   : > { %857 = vst [vmem:[#allocation2 + $0x38] sm:$0xff] %v841_v53  ;;  %856 = vst [vmem:[#allocation2 + $0x30] sm:$0xff] %v840_v54  ;;  %v886_v0 = vpack.c.bf16 %v841_v53, %v840_v54 }
 0x338   : > { %v802_v58 = vpop.permute.xlu1 %801  ;;  %v797_v59 = vpop.permute.xlu0 %796 }
 0x339   : > { %v843_v60 = vmul.f32 %v802_v58, %v731_v55  ;;  %v842_v61 = vmul.f32 %v797_v59, %v730_v56  ;;  %1215 = vmatpush3.bf16.msra.mxu0 %v885_v57 }
 0x33a   : > { %1216 = vmatprep.subr.bf16.mxu0 %v1607_v17 }
 0x33b   : > { %859 = vst [vmem:[#allocation2 + $0x48] sm:$0xff] %v843_v60  ;;  %858 = vst [vmem:[#allocation2 + $0x40] sm:$0xff] %v842_v61  ;;  %v887_v7 = vpack.c.bf16 %v843_v60, %v842_v61 }
 0x33c   : > { %v812_v1 = vpop.permute.xlu1 %811  ;;  %v807_v2 = vpop.permute.xlu0 %806 }
 0x33d   : > { %v845_v3 = vmul.f32 %v812_v1, %v733_v62  ;;  %v844_v4 = vmul.f32 %v807_v2, %v732_v63  ;;  %1217 = vmatpush3.bf16.msra.mxu0 %v886_v0 }
 0x33e   : > { %1218 = vmatprep.subr.bf16.mxu0 %v1607_v17 }
 0x33f   : > { %861 = vst [vmem:[#allocation2 + $0x58] sm:$0xff] %v845_v3  ;;  %860 = vst [vmem:[#allocation2 + $0x50] sm:$0xff] %v844_v4  ;;  %v888_v14 = vpack.c.bf16 %v845_v3, %v844_v4 }
 0x340   : > { %v822_v8 = vpop.permute.xlu1 %821  ;;  %v817_v9 = vpop.permute.xlu0 %816 }
 0x341   : > { %v847_v10 = vmul.f32 %v822_v8, %v735_v5  ;;  %v846_v11 = vmul.f32 %v817_v9, %v734_v6  ;;  %1219 = vmatpush3.bf16.msra.mxu0 %v887_v7 }
 0x342   : > { %1220 = vmatprep.subr.bf16.mxu0 %v1607_v17 }
 0x343   : > { %863 = vst [vmem:[#allocation2 + $0x68] sm:$0xff] %v847_v10  ;;  %862 = vst [vmem:[#allocation2 + $0x60] sm:$0xff] %v846_v11  ;;  %v889_v20 = vpack.c.bf16 %v847_v10, %v846_v11 }
 0x344   : > { %v832_v15 = vpop.permute.xlu1 %831  ;;  %v827_v16 = vpop.permute.xlu0 %826 }
 0x345   : > { %v849_v18 = vmul.f32 %v832_v15, %v737_v12  ;;  %v848_v19 = vmul.f32 %v827_v16, %v736_v13  ;;  %1221 = vmatpush3.bf16.msra.mxu0 %v888_v14 }
 0x346   : > { %1222 = vmatprep.subr.bf16.mxu0 %v1607_v17 }
 0x347   : > { %865 = vst [vmem:[#allocation2 + $0x78] sm:$0xff] %v849_v18  ;;  %864 = vst [vmem:[#allocation2 + $0x70] sm:$0xff] %v848_v19  ;;  %v890_v21 = vpack.c.bf16 %v849_v18, %v848_v19 }
 0x348   : > { %v935_v23 = vpop.permute.xlu0 %934 }
 0x349   : > { %1223 = vmatpush3.bf16.msra.mxu0 %v889_v20 }
 0x34a   : > { %1224 = vmatprep.subr.bf16.mxu0 %v1607_v17 }
 0x34d   : > { %1225 = vmatpush3.bf16.msra.mxu0 %v890_v21 }
 0x350   : > { %1227 = vmatmul.mubr.bf16.vlgmr.msra.gmra.mrb[0].mxu0 %v866_v22 }
 0x423   : > { %v925_v24 = vpop.f32.mrb[0].mxu0 }
 0x424   : > { %v937_v26 = vmul.f32 %v935_v23, %v925_v24  ;;  %v1228_v27 = vpop.f32.mrb[1].mxu0 }
 0x425   : > { %v928_v28 = vpop.f32.mrb[2].mxu0 }
 0x426   : > { %v945_v29 = vadd.f32 %v1139_v25, %v937_v26  ;;  %v1229_v30 = vpop.f32.mrb[3].mxu0 }
 0x428   : > { %946 = vst [vmem:[#allocation14] sm:$0xff] %v945_v29 }
 0x429 PF: > { %p1296_p7 = scmp.eq.s32.totalorder %s1661_s24, 1  ;;  %s1609_s21 = smov [#allocation14]  }
 0x42a   : > { %s962_s27 = sshll.u32 %s1609_s21, 4  ;;  %s963_s27 = int_to_ptr.vmem [resolvable:$true] %s962_s27 }
 0x42b   : > { %s1519_s8 = scalar_lea.vmem %s963_s27, 128  ;;  %s1525_s29 = scalar_lea.vmem %s963_s27, 256 }
 0x42c   : > { %p1520_p8 = scmp.ne.s32.totalorder %s963_s27, %s1519_s8  ;;  %p1526_p11 = scmp.lt.s32.totalorder %s963_s27, %s963_s27 }
 0x42d   : > { %p1527_p4 = scmp.lt.s32.totalorder %s1525_s29, %s1519_s8 }
 0x42e   : > { %p1521_p9 = pnand %p1520_p8, %p1296_p7 }
 0x42f   : > { %p1528_p12 = por %p1527_p4, %p1526_p11 }
 0x430   : > { %p1522_p10 = pneg %p1521_p9 }
 0x432   : > { %p1529_p13 = pnand %p1528_p12, %p1522_p10 }
 0x434   : > { %1532 = shalt.err (!%p1529_p13)
}
 0x435   : > { %s1533_s30 = scalar_lea.hbm %s1902_s6, 128 }
 0x436   : > { %p1534_p0 = scmp.ne.s32.totalorder %s1902_s6, %s1533_s30  ;;  %p1539_p6 = scmp.lt.u32.totalorder %s1533_s30, %s1902_s6 }
 0x438   : > { %p1535_p1 = pnand %p1534_p0, %p1296_p7 }
 0x43a   : > { %p1536_p2 = pneg %p1535_p1 }
 0x43c   : > { %p1541_p5 = pnand %p1539_p6, %p1536_p2 }
 0x43e   : > { %1544 = shalt.err (!%p1541_p5)
}
 0x43f   : > { %1256 = dma.vmem_to_hbm [thread:$0]  (%p1296_p7), %s963_s27, 128, %s1902_s6, [#allocation5]  }
 0x440 PF: > { %p1298_p3 = scmp.eq.s32.totalorder %s1104_s25, 1  ;;  %p1922_p8 = scmp.ge.s32.totalorder %s1591_s23, 2 }
 0x442   : > { %p1280_p9 = pnand %p1298_p3, %p1922_p8 }
 0x444   : > { %1578 = dma.done.wait (!%p1280_p9), [#allocation5], 128  }
 0x445   : > { %1580 = vsyncadd (!%p1280_p9), [#allocation5], 4294967168  ;;  %s27_s23 = sadd.s32 1, %s1591_s23   ;;  %s1923_s21 = smov %s1587_s22 }
 0x446   : > { %p24_p10 = scmp.ge.s32.totalorder %s27_s23, 4   ;;  %s1924_s22 = smov %s1926_s26 }
 0x448   :  { %26 = sbr.rel (!%p24_p10) target bundleno = 9 (0x9), region = 135 }
 0x44f   :  { %980 = vsyncpa [#allocation4], 1 }
 0x450   :  { %982 = vsyncpa [#allocation4 + $0x1], 1 }
 0x451   :  { %983 = vsyncpa [#allocation7], 1 }
 0x452   :  { %984 = vsyncpa [#allocation10], 1 }
 0x453   :  { %986 = vsyncpa [#allocation10 + $0x1], 1 }
 0x454   :  { %987 = vsyncpa [#allocation13], 1 }
 0x455   :  { %988 = vsyncpa [#allocation5], 1 }
 0x456   :  { %990 = vsyncpa [#allocation5 + $0x1], 1 }

</bundles_post_ra>
